<compile_context>
chip_gen: v7x
topology: tpu7x:2x2x1
jax: 0.10.0
libtpu: 0.0.40
codegen_flags: <defaults>
</compile_context>

<pallas_src>
import functools

import jax
import jax.numpy as jnp
from jax.experimental import pallas as pl
from jax.experimental.pallas import tpu as pltpu

_BN_EPS = 1e-5
_HI = jax.lax.Precision.HIGHEST


def _round_up(a, m):
    return (a + m - 1) // m * m


# ---------------------------------------------------------------------------
# Parameter folding (wrapper-side, parameter-only, done once per call).
# ---------------------------------------------------------------------------
def _conv_bn_matrix(w, b, gamma, beta, mean, var, L):
    """Conv1d(k=3, pad=1, stride=1) + eval BatchNorm1d as a dense (C_out*L, C_in*L) map.

    flatten(BN(conv(x))) == A @ flatten(x) + c, flatten order = (channel, length).
    """
    C_out, C_in, K = w.shape
    w = w.astype(jnp.float32)
    A = jnp.zeros((C_out * L, C_in * L), jnp.float32)
    for k in range(K):
        off = k - (K // 2)  # zero padding = K//2 = 1
        A = A + jnp.kron(w[:, :, k], jnp.eye(L, L, off, dtype=jnp.float32))
    s = gamma / jnp.sqrt(var + _BN_EPS)            # per-channel BN scale
    t = beta - mean * s                            # per-channel BN shift
    A = A * jnp.repeat(s, L)[:, None]
    c = jnp.repeat(b * s + t, L)
    return A, c[:, None]


def _avgpool_matrix(C, L):
    """AvgPool1d(kernel=3, stride=3) on a flattened (C, L) map: (C*(L//3), C*L)."""
    Lp = L // 3
    P0 = jnp.kron(jnp.eye(Lp, dtype=jnp.float32),
                  jnp.full((1, 3), 1.0 / 3.0, jnp.float32))        # (Lp, 3*Lp)
    if 3 * Lp < L:
        P0 = jnp.pad(P0, ((0, 0), (0, L - 3 * Lp)))                # AvgPool drops the tail
    return jnp.kron(jnp.eye(C, dtype=jnp.float32), P0), Lp


def fold_mlcp_params(conv_params, bn_params, linear_w, linear_b, L0):
    """Fold [pool_{i-1} ->] conv_i -> bn_i, and pool_N -> flatten -> linear, into dense maps."""
    mats, biases = [], []
    P_prev = None
    L = L0
    for (w, b), (gamma, beta, mean, var) in zip(conv_params, bn_params):
        A, c = _conv_bn_matrix(w, b, gamma, beta, mean, var, L)
        mats.append(A if P_prev is None else jnp.matmul(A, P_prev, precision=_HI))
        biases.append(c)
        P_prev, L = _avgpool_matrix(w.shape[0], L)
    assert P_prev.shape[0] == linear_w.shape[1], (
        "conv stack must flatten to Linear in_features "
        f"({P_prev.shape[0]} vs {linear_w.shape[1]})")
    mats.append(jnp.matmul(linear_w.astype(jnp.float32), P_prev, precision=_HI))
    biases.append(linear_b.astype(jnp.float32)[:, None])
    return mats, biases


# ---------------------------------------------------------------------------
# Pallas kernel: activations carried as (features, batch_tile) -> lane-dense.
# ---------------------------------------------------------------------------
def _mlcp_kernel(n_layers, mxu_dtype, x_ref, *refs):
    """refs = (M_1, c_1, ..., M_n, c_n, out_ref).  x_ref: (tb, L0) in natural layout."""
    out_ref = refs[-1]
    params = refs[:-1]
    # Layer 1: contract x's length axis with M_1's length axis (NT dot_general,
    # same pattern as q @ k^T in flash attention) -> (F1, tb) lane-dense result.
    # The transpose happens on-chip (XLU) instead of as a strided HBM op.
    h = jax.lax.dot_general(
        params[0][...], x_ref[...],
        dimension_numbers=(((1,), (1,)), ((), ())),
        preferred_element_type=jnp.float32) + params[1][...]
    for i in range(1, n_layers):
        h = jnp.maximum(h, 0.0).astype(mxu_dtype)            # ReLU (eval Dropout == identity)
        h = jnp.dot(params[2 * i][...], h,
                    preferred_element_type=jnp.float32) + params[2 * i + 1][...]
    # Sigmoid; reciprocal goes to the EUP slot (co-issues for free).
    out_ref[...] = pl.reciprocal(1.0 + jnp.exp(-h), approx=True).astype(out_ref.dtype)


def mlcp_forward(x, conv_params, bn_params, linear_w, linear_b, *,
                 batch_tile=None, stream_dtype=jnp.bfloat16, mxu_dtype=jnp.bfloat16):
    """Fused MLCP forward (eval semantics). x: (B, L0) or (B, 1, L0). Returns (B, out) f32.

    stream_dtype: dtype x is streamed from HBM in (bf16 halves the dominant HBM
      traffic; ideally the caller already holds x in this dtype so no cast op runs).
    mxu_dtype: dtype of the folded weights / activations fed to the MXU
      (accumulation is always f32).
    """
    x = x.reshape(x.shape[0], x.shape[-1])
    B, L0 = x.shape
    mats, biases = fold_mlcp_params(conv_params, bn_params, linear_w, linear_b, L0)
    mats = [m.astype(mxu_dtype) for m in mats]
    n_layers = len(mats)
    n_out = mats[-1].shape[0]

    # Guard: the dense-folding strategy scales as (C*L)^2 and assumes VMEM residency.
    folded_bytes = sum(m.size * m.dtype.itemsize for m in mats)
    if folded_bytes > 8 * 1024 * 1024:
        raise NotImplementedError(
            "folded weights too large for the VMEM-resident strategy; "
            "see TODO(synk) banded/roll formulation")

    # --- Batch tiling: batch sits on the 128-wide lane axis inside the kernel.
    B128 = _round_up(B, 128)
    n_chunks = B128 // 128
    if batch_tile is None:
        if n_chunks <= 1:
            steps = 1
        else:
            steps = max(2, pl.cdiv(B128, 4096))     # tile <= 4096 lanes, >= 2 steps
            if steps % 2:                           # even step count -> v7x's 2 TCs balance
                steps += 1
            steps = min(steps, n_chunks)
        tb = pl.cdiv(n_chunks, steps) * 128
    else:
        tb = max(128, _round_up(min(batch_tile, B128), 128))
        steps = pl.cdiv(B128, tb)
    Bp = steps * tb

    x = x.astype(stream_dtype)                      # bf16 stream (upcast happens on-chip)
    if Bp != B:
        x = jnp.pad(x, ((0, Bp - B), (0, 0)))       # zero-pad ragged batch; sliced off below

    in_specs = [pl.BlockSpec((tb, L0), lambda i: (i, 0))]   # natural layout, no HBM transpose
    flat_params = []
    for m, c in zip(mats, biases):
        # Grid-invariant (index_map always (0,0)) -> weights stay VMEM-resident.
        in_specs.append(pl.BlockSpec(m.shape, lambda i: (0, 0)))
        in_specs.append(pl.BlockSpec(c.shape, lambda i: (0, 0)))
        flat_params += [m, c]

    # Explicit scoped-VMEM limit so large tiles don't hit v5e's 16 MiB default
    # (capped below v7x's 64 MiB physical VMEM).
    est = (2 * tb * L0 * jnp.dtype(stream_dtype).itemsize       # x tile, double-buffered
           + 2 * n_out * tb * 4                                  # out tile, double-buffered
           + 2 * sum(m.size * m.dtype.itemsize + c.size * 4
                     for m, c in zip(mats, biases))              # resident weights (x2 buf)
           + 2 * sum(m.shape[0] for m in mats) * tb * 4)         # live activations (upper bound)
    vmem_limit = int(min(48 * 1024 * 1024, max(32 * 1024 * 1024, 2 * est)))

    out_t = pl.pallas_call(
        functools.partial(_mlcp_kernel, n_layers, mxu_dtype),
        out_shape=jax.ShapeDtypeStruct((n_out, Bp), jnp.float32),
        grid_spec=pltpu.PrefetchScalarGridSpec(
            num_scalar_prefetch=0,
            grid=(steps,),
            in_specs=in_specs,
            out_specs=pl.BlockSpec((n_out, tb), lambda i: (0, i)),   # lane-dense output
        ),
        compiler_params=pltpu.CompilerParams(
            dimension_semantics=("parallel",),
            vmem_limit_bytes=vmem_limit),
    )(x, *flat_params)

    return out_t.T[:B].astype(jnp.float32)          # (B, out); transpose of n_out rows is tiny


# ---------------------------------------------------------------------------
# Parameter init (PyTorch-like shapes; non-trivial BN stats so the path is tested)
# ---------------------------------------------------------------------------
def init_params(key, sizes, out_features, L0):
    conv_params, bn_params = [], []
    for i in range(len(sizes) - 1):
        c_in, c_out = sizes[i], sizes[i + 1]
        key, kw, kb, kg, kbe, km, kv = jax.random.split(key, 7)
        bound = 1.0 / (c_in * 3) ** 0.5
        w = jax.random.uniform(kw, (c_out, c_in, 3), jnp.float32, -bound, bound)
        b = jax.random.uniform(kb, (c_out,), jnp.float32, -bound, bound)
        gamma = jax.random.uniform(kg, (c_out,), jnp.float32, 0.5, 1.5)
        beta = jax.random.uniform(kbe, (c_out,), jnp.float32, -0.5, 0.5)
        mean = jax.random.uniform(km, (c_out,), jnp.float32, -0.5, 0.5)
        var = jax.random.uniform(kv, (c_out,), jnp.float32, 0.5, 1.5)
        conv_params.append((w, b))
        bn_params.append((gamma, beta, mean, var))
    L = L0
    for _ in range(len(sizes) - 1):
        L = L // 3
    feat = sizes[-1] * L
    assert feat == 64, f"module hard-codes Linear(64, out); got {feat} flattened features"
    key, kw, kb = jax.random.split(key, 3)
    bound = 1.0 / 64 ** 0.5
    linear_w = jax.random.uniform(kw, (out_features, 64), jnp.float32, -bound, bound)
    linear_b = jax.random.uniform(kb, (out_features,), jnp.float32, -bound, bound)
    return conv_params, bn_params, linear_w, linear_b


# ---------------------------------------------------------------------------
# Unfolded pure-JAX reference (mirrors the PyTorch module layer by layer).
# ---------------------------------------------------------------------------
def ref_forward(x, conv_params, bn_params, linear_w, linear_b):
    B = x.shape[0]
    h = x.reshape(B, 1, x.shape[-1]).astype(jnp.float32)
    for (w, b), (gamma, beta, mean, var) in zip(conv_params, bn_params):
        L = h.shape[-1]
        hp = jnp.pad(h, ((0, 0), (0, 0), (1, 1)))                      # padding=1
        conv = jnp.zeros((B, w.shape[0], L), jnp.float32)
        for k in range(3):
            conv = conv + jnp.einsum('oi,bil->bol', w[:, :, k], hp[:, :, k:k + L],
                                     precision=_HI)
        conv = conv + b[None, :, None]
        h = (conv - mean[None, :, None]) * (gamma / jnp.sqrt(var + _BN_EPS))[None, :, None] \
            + beta[None, :, None]
        h = jnp.maximum(h, 0.0)                                        # ReLU
        Lp = L // 3                                                    # AvgPool1d(3)
        h = h[:, :, :Lp * 3].reshape(B, h.shape[1], Lp, 3).mean(-1)
        # Dropout: identity in eval
    h = h.reshape(B, -1)                                               # flatten
    y = jnp.matmul(h, linear_w.T, precision=_HI) + linear_b            # Linear(64, out)
    return 1.0 / (1.0 + jnp.exp(-y))                                   # Sigmoid


if __name__ == "__main__":
    # sizes = [1, 4, 8]: x is viewed to 1 channel; seq 72 -> pool -> 24 -> pool -> 8;
    # flatten = 8 * 8 = 64 = Linear in_features.  out = 2.
    sizes = [1, 4, 8]
    out_features = 2
    seq_len = 72
    # drops = [0.1]  # Dropout is identity at inference -> unused here.

    key = jax.random.PRNGKey(0)
    key, kx1, kx2 = jax.random.split(key, 3)
    conv_params, bn_params, linear_w, linear_b = init_params(key, sizes, out_features, seq_len)

    # batch=8   -> single grid step (tiny demo shape)
    # batch=300 -> ragged batch, 2 even grid steps (exercises padding + multi-tile path)
    for batch, kx in ((8, kx1), (300, kx2)):
        x = jax.random.normal(kx, (batch, seq_len), jnp.float32)

        y = mlcp_forward(x, conv_params, bn_params, linear_w, linear_b)
        y = jax.block_until_ready(y)

        # Reference sees the same bf16-quantized input the kernel streams; tolerance
        # accounts for bf16 folded weights / activations (f32 accumulation).
        x_q = x.astype(jnp.bfloat16).astype(jnp.float32)
        y_ref = ref_forward(x_q, conv_params, bn_params, linear_w, linear_b)

        assert y.shape == (batch, out_features)
        assert bool(jnp.all(jnp.isfinite(y)))
        err = float(jnp.max(jnp.abs(y - y_ref)))
        assert jnp.allclose(y, y_ref, atol=2e-2, rtol=2e-2), err

    print("KERNEL_OK")
</pallas_src>

<mosaic_0001>
module attributes {stable_mosaic.version = 11 : i64} {
  func.func @_mlcp_kernel(%arg0: i32, %arg1: memref<128x72xbf16, #tpu.memory_space<vmem>>, %arg2: memref<288x72xbf16, #tpu.memory_space<vmem>>, %arg3: memref<288x1xf32, #tpu.memory_space<vmem>>, %arg4: memref<192x288xbf16, #tpu.memory_space<vmem>>, %arg5: memref<192x1xf32, #tpu.memory_space<vmem>>, %arg6: memref<2x192xbf16, #tpu.memory_space<vmem>>, %arg7: memref<2x1xf32, #tpu.memory_space<vmem>>, %arg8: memref<2x128xf32, #tpu.memory_space<vmem>>) attributes {dimension_semantics = [#tpu.dimension_semantics<parallel>], iteration_bounds = array<i64: 1>, scalar_prefetch = 0 : i64, scratch_operands = 0 : i64, tpu.core_type = #tpu.core_type<tc>, window_params = [{transform_indices = @transform_0, window_bounds = array<i64: 128, 72>}, {pipeline_mode = #tpu.pipeline_mode<synchronous>, transform_indices = @transform_1, window_bounds = array<i64: 288, 72>}, {pipeline_mode = #tpu.pipeline_mode<synchronous>, transform_indices = @transform_2, window_bounds = array<i64: 288, 1>}, {pipeline_mode = #tpu.pipeline_mode<synchronous>, transform_indices = @transform_3, window_bounds = array<i64: 192, 288>}, {pipeline_mode = #tpu.pipeline_mode<synchronous>, transform_indices = @transform_4, window_bounds = array<i64: 192, 1>}, {pipeline_mode = #tpu.pipeline_mode<synchronous>, transform_indices = @transform_5, window_bounds = array<i64: 2, 192>}, {pipeline_mode = #tpu.pipeline_mode<synchronous>, transform_indices = @transform_6, window_bounds = array<i64: 2, 1>}, {transform_indices = @transform_7, window_bounds = array<i64: 2, 128>}]} {
    %c0 = arith.constant 0 : index
    %c0_0 = arith.constant 0 : index
    %0 = vector.load %arg2[%c0, %c0_0] : memref<288x72xbf16, #tpu.memory_space<vmem>>, vector<288x72xbf16>
    %c0_1 = arith.constant 0 : index
    %c0_2 = arith.constant 0 : index
    %1 = vector.load %arg1[%c0_1, %c0_2] : memref<128x72xbf16, #tpu.memory_space<vmem>>, vector<128x72xbf16>
    %cst = arith.constant dense<0.000000e+00> : vector<288x128xf32>
    %2 = tpu.matmul %0, %1, %cst {dimension_numbers = #tpu.dot_dimension_numbers<[1], [1], [0], [0], [0, 0, 1, 0], [], []>} : vector<288x72xbf16>, vector<128x72xbf16>, vector<288x128xf32> -> vector<288x128xf32>
    %c0_3 = arith.constant 0 : index
    %c0_4 = arith.constant 0 : index
    %3 = vector.load %arg3[%c0_3, %c0_4] : memref<288x1xf32, #tpu.memory_space<vmem>>, vector<288x1xf32>
    %4 = vector.broadcast %3 : vector<288x1xf32> to vector<288x128xf32>
    %5 = arith.addf %2, %4 : vector<288x128xf32>
    %cst_5 = arith.constant 0.000000e+00 : f32
    %6 = vector.broadcast %cst_5 : f32 to vector<288x128xf32>
    %7 = arith.maximumf %5, %6 : vector<288x128xf32>
    %8 = arith.truncf %7 : vector<288x128xf32> to vector<288x128xbf16>
    %c0_6 = arith.constant 0 : index
    %c0_7 = arith.constant 0 : index
    %9 = vector.load %arg4[%c0_6, %c0_7] : memref<192x288xbf16, #tpu.memory_space<vmem>>, vector<192x288xbf16>
    %cst_8 = arith.constant dense<0.000000e+00> : vector<192x128xf32>
    %10 = tpu.matmul %9, %8, %cst_8 {dimension_numbers = #tpu.dot_dimension_numbers<[1], [0], [0], [1], [0, 0, 1, 1], [], []>} : vector<192x288xbf16>, vector<288x128xbf16>, vector<192x128xf32> -> vector<192x128xf32>
    %c0_9 = arith.constant 0 : index
    %c0_10 = arith.constant 0 : index
    %11 = vector.load %arg5[%c0_9, %c0_10] : memref<192x1xf32, #tpu.memory_space<vmem>>, vector<192x1xf32>
    %12 = vector.broadcast %11 : vector<192x1xf32> to vector<192x128xf32>
    %13 = arith.addf %10, %12 : vector<192x128xf32>
    %cst_11 = arith.constant 0.000000e+00 : f32
    %14 = vector.broadcast %cst_11 : f32 to vector<192x128xf32>
    %15 = arith.maximumf %13, %14 : vector<192x128xf32>
    %16 = arith.truncf %15 : vector<192x128xf32> to vector<192x128xbf16>
    %c0_12 = arith.constant 0 : index
    %c0_13 = arith.constant 0 : index
    %17 = vector.load %arg6[%c0_12, %c0_13] : memref<2x192xbf16, #tpu.memory_space<vmem>>, vector<2x192xbf16>
    %cst_14 = arith.constant dense<0.000000e+00> : vector<2x128xf32>
    %18 = tpu.matmul %17, %16, %cst_14 {dimension_numbers = #tpu.dot_dimension_numbers<[1], [0], [0], [1], [0, 0, 1, 1], [], []>} : vector<2x192xbf16>, vector<192x128xbf16>, vector<2x128xf32> -> vector<2x128xf32>
    %c0_15 = arith.constant 0 : index
    %c0_16 = arith.constant 0 : index
    %19 = vector.load %arg7[%c0_15, %c0_16] : memref<2x1xf32, #tpu.memory_space<vmem>>, vector<2x1xf32>
    %20 = vector.broadcast %19 : vector<2x1xf32> to vector<2x128xf32>
    %21 = arith.addf %18, %20 : vector<2x128xf32>
    %cst_17 = arith.constant 0.000000e+00 : f32
    %22 = vector.broadcast %cst_17 : f32 to vector<2x128xf32>
    %23 = arith.subf %22, %21 : vector<2x128xf32>
    %24 = math.exp %23 : vector<2x128xf32>
    %cst_18 = arith.constant 1.000000e+00 : f32
    %25 = vector.broadcast %cst_18 : f32 to vector<2x128xf32>
    %26 = arith.addf %25, %24 : vector<2x128xf32>
    %27 = tpu.reciprocal %26 {approx = true} : vector<2x128xf32> -> vector<2x128xf32>
    %c0_19 = arith.constant 0 : index
    %c0_20 = arith.constant 0 : index
    %28 = vector.load %arg8[%c0_19, %c0_20] : memref<2x128xf32, #tpu.memory_space<vmem>>, vector<2x128xf32>
    tpu.vector_store %arg8[%c0_19, %c0_20], %27 {strides = array<i32>} : memref<2x128xf32, #tpu.memory_space<vmem>>, vector<2x128xf32>,
    return
  }
  func.func @transform_0(%arg0: i32) -> (i32, i32) {
    %c0_i32 = arith.constant 0 : i32
    %c0_i32_0 = arith.constant 0 : i32
    return %arg0, %c0_i32 : i32, i32
  }
  func.func @transform_1(%arg0: i32) -> (i32, i32) {
    %c0_i32 = arith.constant 0 : i32
    %c0_i32_0 = arith.constant 0 : i32
    %c0_i32_1 = arith.constant 0 : i32
    return %c0_i32, %c0_i32_0 : i32, i32
  }
  func.func @transform_2(%arg0: i32) -> (i32, i32) {
    %c0_i32 = arith.constant 0 : i32
    %c0_i32_0 = arith.constant 0 : i32
    %c0_i32_1 = arith.constant 0 : i32
    return %c0_i32, %c0_i32_0 : i32, i32
  }
  func.func @transform_3(%arg0: i32) -> (i32, i32) {
    %c0_i32 = arith.constant 0 : i32
    %c0_i32_0 = arith.constant 0 : i32
    %c0_i32_1 = arith.constant 0 : i32
    return %c0_i32, %c0_i32_0 : i32, i32
  }
  func.func @transform_4(%arg0: i32) -> (i32, i32) {
    %c0_i32 = arith.constant 0 : i32
    %c0_i32_0 = arith.constant 0 : i32
    %c0_i32_1 = arith.constant 0 : i32
    return %c0_i32, %c0_i32_0 : i32, i32
  }
  func.func @transform_5(%arg0: i32) -> (i32, i32) {
    %c0_i32 = arith.constant 0 : i32
    %c0_i32_0 = arith.constant 0 : i32
    %c0_i32_1 = arith.constant 0 : i32
    return %c0_i32, %c0_i32_0 : i32, i32
  }
  func.func @transform_6(%arg0: i32) -> (i32, i32) {
    %c0_i32 = arith.constant 0 : i32
    %c0_i32_0 = arith.constant 0 : i32
    %c0_i32_1 = arith.constant 0 : i32
    return %c0_i32, %c0_i32_0 : i32, i32
  }
  func.func @transform_7(%arg0: i32) -> (i32, i32) {
    %c0_i32 = arith.constant 0 : i32
    %c0_i32_0 = arith.constant 0 : i32
    return %c0_i32, %arg0 : i32, i32
  }
}

</mosaic_0001>

<bundles_post_ra>
// kernel: tpu_custom_call.1
= control target key start
LH: loop header
LB: loop body
LE: loop exit
PB: predicated region body
PF: predicated region fallthrough
CT: control target
= control target key end

     0   :  { %vm426_vm0 = vcmask 588800   ;;  %v1951_v3 = vmov 0   ;;  %s2594_s0 = inlined_call_operand.vmem [shape: bf16[128,72], index: 0, kind: input, shape index: {}]   ;;  %s2595_s1 = inlined_call_operand.vmem [shape: bf16[288,72], index: 1, kind: input, shape index: {}]   ;;  %s2596_s2 = inlined_call_operand.vmem [shape: f32[288,1], index: 2, kind: input, shape index: {}]   ;;  %s2597_s3 = inlined_call_operand.vmem [shape: bf16[192,288], index: 3, kind: input, shape index: {}]   ;;  %s2598_s4 = inlined_call_operand.vmem [shape: f32[192,1], index: 4, kind: input, shape index: {}]   ;;  %s2599_s5 = inlined_call_operand.vmem [shape: bf16[2,192], index: 5, kind: input, shape index: {}]   ;;  %s2600_s6 = inlined_call_operand.vmem [shape: f32[2,1], index: 6, kind: input, shape index: {}]   ;;  %s2601_s7 = inlined_call_operand.hbm [shape: f32[2,128], index: 7, kind: output, shape index: {}]  }
   0x1   :  { %v1849_v0 = vld [vmem:[%s2594_s0] sm:$0xff]   ;;  %v1850_v1 = vld [vmem:[%s2594_s0 + $0x8] sm:$0xff]   ;;  %1847 = vset.pattern.permute.xlu0 %v1951_v3  ;;  %1848 = vset.pattern.permute.xlu1 %v1951_v3  ;;  %v1851_v9 = vld [vmem:[%s2594_s0 + $0x10] sm:$0xff]  }
   0x2   :  { %1836 = vmatprep.subr.msk.bf16.mxu0 %vm426_vm0, %v1849_v0  ;;  %v482_v2 = vsel %vm426_vm0, %v1849_v0, 0  ;;  %v96_v4 = vld [vmem:[%s2596_s2 + $0x80] sm:$0xff]  ;;  %v97_v6 = vld [vmem:[%s2596_s2 + $0x88] sm:$0xff]  ;;  %v485_v8 = vsel %vm426_vm0, %v1850_v1, 0  ;;  %v98_v10 = vld [vmem:[%s2596_s2 + $0x90] sm:$0xff]  ;;  %v488_v15 = vsel %vm426_vm0, %v1851_v9, 0 }
   0x3   :  { %1757 = vmatpush3.bf16.xpose.msra.mxu0 %v482_v2  ;;  %198 = vperm.xlu0 %1847, %v96_v4   ;;  %v80_v5 = vld [vmem:[%s2596_s2] sm:$0xff]  ;;  %v81_v7 = vld [vmem:[%s2596_s2 + $0x8] sm:$0xff]  ;;  %v99_v11 = vld [vmem:[%s2596_s2 + $0x98] sm:$0xff] }
   0x4   :  { %1837 = vmatprep.subr.msk.bf16.mxu0 %vm426_vm0, %v1850_v1  ;;  %118 = vperm.xlu1 %1848, %v80_v5   ;;  %v1857_v12 = vld [vmem:[%s2595_s1] sm:$0xff]   ;;  %v82_v13 = vld [vmem:[%s2596_s2 + $0x10] sm:$0xff]  ;;  %v83_v14 = vld [vmem:[%s2596_s2 + $0x18] sm:$0xff] }
   0x5   :  { %1772 = vmatprep.mubr.msk.bf16.mxu0 %vm426_vm0, %v1857_v12  ;;  %v1852_v16 = vld [vmem:[%s2594_s0 + $0x18] sm:$0xff]   ;;  %v100_v17 = vld [vmem:[%s2596_s2 + $0xa0] sm:$0xff]  ;;  %v101_v18 = vld [vmem:[%s2596_s2 + $0xa8] sm:$0xff] }
   0x6   :  { %v84_v19 = vld [vmem:[%s2596_s2 + $0x20] sm:$0xff]  ;;  %v85_v20 = vld [vmem:[%s2596_s2 + $0x28] sm:$0xff]  ;;  %v491_v21 = vsel %vm426_vm0, %v1852_v16, 0  ;;  %v102_v23 = vld [vmem:[%s2596_s2 + $0xb0] sm:$0xff] }
   0x7   :  { %203 = vperm.xlu0 %1847, %v97_v6   ;;  %v1853_v22 = vld [vmem:[%s2594_s0 + $0x20] sm:$0xff]   ;;  %v103_v24 = vld [vmem:[%s2596_s2 + $0xb8] sm:$0xff]  ;;  %v86_v25 = vld [vmem:[%s2596_s2 + $0x30] sm:$0xff] }
   0x8   :  { %123 = vperm.xlu1 %1848, %v81_v7   ;;  %v87_v26 = vld [vmem:[%s2596_s2 + $0x38] sm:$0xff]  ;;  %v494_v27 = vsel %vm426_vm0, %v1853_v22, 0  ;;  %v1854_v28 = vld [vmem:[%s2594_s0 + $0x28] sm:$0xff]   ;;  %v104_v29 = vld [vmem:[%s2596_s2 + $0xc0] sm:$0xff] }
   0x9   :  { %v105_v30 = vld [vmem:[%s2596_s2 + $0xc8] sm:$0xff]  ;;  %v88_v31 = vld [vmem:[%s2596_s2 + $0x40] sm:$0xff]  ;;  %v497_v33 = vsel %vm426_vm0, %v1854_v28, 0  ;;  %v1855_v34 = vld [vmem:[%s2594_s0 + $0x30] sm:$0xff]  }
   0xa   :  { %v89_v32 = vld [vmem:[%s2596_s2 + $0x48] sm:$0xff]  ;;  %v106_v35 = vld [vmem:[%s2596_s2 + $0xd0] sm:$0xff]  ;;  %v107_v36 = vld [vmem:[%s2596_s2 + $0xd8] sm:$0xff]  ;;  %v500_v40 = vsel %vm426_vm0, %v1855_v34, 0 }
   0xb   :  { %1759 = vmatpush3.bf16.xpose.msra.mxu0 %v485_v8  ;;  %208 = vperm.xlu0 %1847, %v98_v10   ;;  %v90_v37 = vld [vmem:[%s2596_s2 + $0x50] sm:$0xff]  ;;  %v1856_v38 = vld [vmem:[%s2594_s0 + $0x38] sm:$0xff]   ;;  %v108_v41 = vld [vmem:[%s2596_s2 + $0xe0] sm:$0xff] }
   0xc   :  { %1838 = vmatprep.subr.msk.bf16.mxu0 %vm426_vm0, %v1851_v9  ;;  %213 = vperm.xlu1 %1848, %v99_v11   ;;  %v91_v39 = vld [vmem:[%s2596_s2 + $0x58] sm:$0xff]  ;;  %v109_v42 = vld [vmem:[%s2596_s2 + $0xe8] sm:$0xff]  ;;  %v92_v43 = vld [vmem:[%s2596_s2 + $0x60] sm:$0xff]  ;;  %v503_v45 = vsel %vm426_vm0, %v1856_v38, 0 }
   0xd   :  { %v93_v44 = vld [vmem:[%s2596_s2 + $0x68] sm:$0xff]  ;;  %v110_v46 = vld [vmem:[%s2596_s2 + $0xf0] sm:$0xff]  ;;  %v111_v47 = vld [vmem:[%s2596_s2 + $0xf8] sm:$0xff] }
   0xe   :  { %v1858_v48 = vld [vmem:[%s2595_s1 + $0x8] sm:$0xff]   ;;  %v94_v49 = vld [vmem:[%s2596_s2 + $0x70] sm:$0xff] }
   0xf   :  { %128 = vperm.xlu0 %1847, %v82_v13  }
  0x10   :  { %133 = vperm.xlu1 %1848, %v83_v14  }
  0x13   :  { %1761 = vmatpush3.bf16.xpose.msra.mxu0 %v488_v15  ;;  %218 = vperm.xlu0 %1847, %v100_v17  }
  0x14   :  { %1839 = vmatprep.subr.msk.bf16.mxu0 %vm426_vm0, %v1852_v16  ;;  %223 = vperm.xlu1 %1848, %v101_v18  }
  0x17   :  { %138 = vperm.xlu0 %1847, %v84_v19  }
  0x18   :  { %143 = vperm.xlu1 %1848, %v85_v20  }
  0x1b   :  { %1763 = vmatpush3.bf16.xpose.msra.mxu0 %v491_v21  ;;  %228 = vperm.xlu0 %1847, %v102_v23  }
  0x1c   :  { %1840 = vmatprep.subr.msk.bf16.mxu0 %vm426_vm0, %v1853_v22  ;;  %233 = vperm.xlu1 %1848, %v103_v24  }
  0x1f   :  { %148 = vperm.xlu0 %1847, %v86_v25  }
  0x20   :  { %153 = vperm.xlu1 %1848, %v87_v26  }
  0x23   :  { %1765 = vmatpush3.bf16.xpose.msra.mxu0 %v494_v27  ;;  %238 = vperm.xlu0 %1847, %v104_v29  }
  0x24   :  { %1841 = vmatprep.subr.msk.bf16.mxu0 %vm426_vm0, %v1854_v28  ;;  %243 = vperm.xlu1 %1848, %v105_v30  }
  0x27   :  { %158 = vperm.xlu0 %1847, %v88_v31  }
  0x28   :  { %163 = vperm.xlu1 %1848, %v89_v32  }
  0x2b   :  { %1767 = vmatpush3.bf16.xpose.msra.mxu0 %v497_v33  ;;  %248 = vperm.xlu0 %1847, %v106_v35  }
  0x2c   :  { %1842 = vmatprep.subr.msk.bf16.mxu0 %vm426_vm0, %v1855_v34  ;;  %253 = vperm.xlu1 %1848, %v107_v36  }
  0x2f   :  { %168 = vperm.xlu0 %1847, %v90_v37  }
  0x30   :  { %173 = vperm.xlu1 %1848, %v91_v39  }
  0x33   :  { %1769 = vmatpush3.bf16.xpose.msra.mxu0 %v500_v40  ;;  %258 = vperm.xlu0 %1847, %v108_v41  }
  0x34   :  { %1843 = vmatprep.subr.msk.bf16.mxu0 %vm426_vm0, %v1856_v38  ;;  %263 = vperm.xlu1 %1848, %v109_v42  }
  0x37   :  { %178 = vperm.xlu0 %1847, %v92_v43  }
  0x38   :  { %183 = vperm.xlu1 %1848, %v93_v44  }
  0x3b   :  { %1771 = vmatpush3.bf16.xpose.msra.mxu0 %v503_v45  ;;  %268 = vperm.xlu0 %1847, %v110_v46  }
  0x3c   :  { %1474 = vmatprep.subr.bf16.mxu0 %v1951_v3  ;;  %273 = vperm.xlu1 %1848, %v111_v47  }
  0x3d   :  { %12 = vsyncpa [#allocation3], 0  ;;  %v1859_v50 = vld [vmem:[%s2595_s1 + $0x10] sm:$0xff]   ;;  %v95_v51 = vld [vmem:[%s2596_s2 + $0x78] sm:$0xff]  ;;  %vm1108_vm1 = vcmask 261120   ;;  %vm1470_vm2 = vcmask 523264  }
  0x3e   :  { %v112_v52 = vld [vmem:[%s2596_s2 + $0x100] sm:$0xff]  ;;  %v113_v53 = vld [vmem:[%s2596_s2 + $0x108] sm:$0xff]  ;;  %v1860_v54 = vld [vmem:[%s2595_s1 + $0x18] sm:$0xff]  }
  0x3f   :  { %188 = vperm.xlu0 %1847, %v94_v49   ;;  %v114_v55 = vld [vmem:[%s2596_s2 + $0x110] sm:$0xff]  ;;  %v1861_v56 = vld [vmem:[%s2595_s1 + $0x20] sm:$0xff]   ;;  %v115_v57 = vld [vmem:[%s2596_s2 + $0x118] sm:$0xff] }
  0x40   :  { %193 = vperm.xlu1 %1848, %v95_v51   ;;  %v784_v58 = vld [vmem:[%s2598_s4] sm:$0xff]  ;;  %v785_v59 = vld [vmem:[%s2598_s4 + $0x8] sm:$0xff]  ;;  %v786_v61 = vld [vmem:[%s2598_s4 + $0x10] sm:$0xff] }
  0x41   :  { %v1862_v60 = vld [vmem:[%s2595_s1 + $0x28] sm:$0xff]   ;;  %v1863_v62 = vld [vmem:[%s2595_s1 + $0x30] sm:$0xff]   ;;  %v787_v63 = vld [vmem:[%s2598_s4 + $0x18] sm:$0xff] }
  0x42   :  { %1773 = vmatmul.mubr.msk.bf16.vlgmr.msra.gmra.mrb[0].mxu0 %vm426_vm0, %v1858_v48  ;;  %v788_v0 = vld [vmem:[%s2598_s4 + $0x20] sm:$0xff]  ;;  %v789_v1 = vld [vmem:[%s2598_s4 + $0x28] sm:$0xff]  ;;  %v1864_v2 = vld [vmem:[%s2595_s1 + $0x38] sm:$0xff]  }
  0x43   :  { %1776 = vmatprep.mubr.msk.bf16.mxu0 %vm426_vm0, %v1859_v50  ;;  %278 = vperm.xlu0 %1847, %v112_v52   ;;  %v790_v4 = vld [vmem:[%s2598_s4 + $0x30] sm:$0xff]  ;;  %v1865_v5 = vld [vmem:[%s2595_s1 + $0x40] sm:$0xff]   ;;  %v791_v6 = vld [vmem:[%s2598_s4 + $0x38] sm:$0xff] }
  0x44   :  { %283 = vperm.xlu1 %1848, %v113_v53   ;;  %v792_v7 = vld [vmem:[%s2598_s4 + $0x40] sm:$0xff]  ;;  %v793_v8 = vld [vmem:[%s2598_s4 + $0x48] sm:$0xff]  ;;  %v794_v10 = vld [vmem:[%s2598_s4 + $0x50] sm:$0xff] }
  0x45   :  { %v1866_v9 = vld [vmem:[%s2595_s1 + $0x48] sm:$0xff]   ;;  %v1867_v11 = vld [vmem:[%s2595_s1 + $0x50] sm:$0xff]   ;;  %v795_v12 = vld [vmem:[%s2598_s4 + $0x58] sm:$0xff] }
  0x46   :  { %v796_v13 = vld [vmem:[%s2598_s4 + $0x60] sm:$0xff]  ;;  %v797_v14 = vld [vmem:[%s2598_s4 + $0x68] sm:$0xff]  ;;  %v1868_v15 = vld [vmem:[%s2595_s1 + $0x58] sm:$0xff]  }
  0x47   :  { %288 = vperm.xlu0 %1847, %v114_v55   ;;  %v798_v16 = vld [vmem:[%s2598_s4 + $0x70] sm:$0xff]  ;;  %v1869_v17 = vld [vmem:[%s2595_s1 + $0x60] sm:$0xff]   ;;  %v799_v18 = vld [vmem:[%s2598_s4 + $0x78] sm:$0xff] }
  0x48   :  { %293 = vperm.xlu1 %1848, %v115_v57   ;;  %v800_v19 = vld [vmem:[%s2598_s4 + $0x80] sm:$0xff]  ;;  %v801_v20 = vld [vmem:[%s2598_s4 + $0x88] sm:$0xff]  ;;  %v802_v22 = vld [vmem:[%s2598_s4 + $0x90] sm:$0xff] }
  0x49   :  { %v1870_v21 = vld [vmem:[%s2595_s1 + $0x68] sm:$0xff]   ;;  %v1871_v23 = vld [vmem:[%s2595_s1 + $0x70] sm:$0xff]   ;;  %v803_v24 = vld [vmem:[%s2598_s4 + $0x98] sm:$0xff] }
  0x4a   :  { %1777 = vmatmul.mubr.msk.bf16.gmra.mrb[4].mxu0 %vm426_vm0, %v1860_v54  ;;  %v804_v25 = vld [vmem:[%s2598_s4 + $0xa0] sm:$0xff]  ;;  %v805_v26 = vld [vmem:[%s2598_s4 + $0xa8] sm:$0xff]  ;;  %v1872_v27 = vld [vmem:[%s2595_s1 + $0x78] sm:$0xff]  }
  0x4b   :  { %1780 = vmatprep.mubr.msk.bf16.mxu0 %vm426_vm0, %v1861_v56  ;;  %810 = vperm.xlu0 %1847, %v784_v58   ;;  %v806_v28 = vld [vmem:[%s2598_s4 + $0xb0] sm:$0xff]  ;;  %v1873_v29 = vld [vmem:[%s2595_s1 + $0x80] sm:$0xff]   ;;  %v807_v30 = vld [vmem:[%s2598_s4 + $0xb8] sm:$0xff] }
  0x4c   :  { %815 = vperm.xlu1 %1848, %v785_v59   ;;  %v1440_v31 = vld [vmem:[%s2600_s6] sm:$0x3]  ;;  %v1874_v32 = vld [vmem:[%s2595_s1 + $0x88] sm:$0xff]   ;;  %v1877_v37 = vld [vmem:[%s2597_s3 + $0x4] ss:$12 sps:$4 sm:$0xff]  }
  0x4d   :  { %1177 = vmatprep.mubr.bf16.mxu1 %v1877_v37 }
  0x4f   :  { %820 = vperm.xlu0 %1847, %v786_v61  }
  0x50   :  { %825 = vperm.xlu1 %1848, %v787_v63  }
  0x52   :  { %1781 = vmatmul.mubr.msk.bf16.gmra.mrb[8].mxu0 %vm426_vm0, %v1862_v60 }
  0x53   :  { %1784 = vmatprep.mubr.msk.bf16.mxu0 %vm426_vm0, %v1863_v62  ;;  %830 = vperm.xlu0 %1847, %v788_v0  }
  0x54   :  { %835 = vperm.xlu1 %1848, %v789_v1  }
  0x57   :  { %840 = vperm.xlu0 %1847, %v790_v4  }
  0x58   :  { %845 = vperm.xlu1 %1848, %v791_v6  }
  0x5a   :  { %1785 = vmatmul.mubr.msk.bf16.gmra.mrb[12].mxu0 %vm426_vm0, %v1864_v2 }
  0x5b   :  { %1788 = vmatprep.mubr.msk.bf16.mxu0 %vm426_vm0, %v1865_v5  ;;  %850 = vperm.xlu0 %1847, %v792_v7  }
  0x5c   :  { %855 = vperm.xlu1 %1848, %v793_v8  }
  0x5f   :  { %860 = vperm.xlu0 %1847, %v794_v10  }
  0x60   :  { %865 = vperm.xlu1 %1848, %v795_v12  }
  0x62   :  { %1789 = vmatmul.mubr.msk.bf16.gmra.mrb[16].mxu0 %vm426_vm0, %v1866_v9 }
  0x63   :  { %1792 = vmatprep.mubr.msk.bf16.mxu0 %vm426_vm0, %v1867_v11  ;;  %870 = vperm.xlu0 %1847, %v796_v13  }
  0x64   :  { %875 = vperm.xlu1 %1848, %v797_v14  }
  0x67   :  { %880 = vperm.xlu0 %1847, %v798_v16  }
  0x68   :  { %885 = vperm.xlu1 %1848, %v799_v18  }
  0x6a   :  { %1793 = vmatmul.mubr.msk.bf16.gmra.mrb[20].mxu0 %vm426_vm0, %v1868_v15 }
  0x6b   :  { %1796 = vmatprep.mubr.msk.bf16.mxu0 %vm426_vm0, %v1869_v17  ;;  %890 = vperm.xlu0 %1847, %v800_v19  }
  0x6c   :  { %895 = vperm.xlu1 %1848, %v801_v20  }
  0x6f   :  { %900 = vperm.xlu0 %1847, %v802_v22  }
  0x70   :  { %905 = vperm.xlu1 %1848, %v803_v24  }
  0x72   :  { %1797 = vmatmul.mubr.msk.bf16.gmra.mrb[24].mxu0 %vm426_vm0, %v1870_v21 }
  0x73   :  { %1800 = vmatprep.mubr.msk.bf16.mxu0 %vm426_vm0, %v1871_v23  ;;  %910 = vperm.xlu0 %1847, %v804_v25  }
  0x74   :  { %915 = vperm.xlu1 %1848, %v805_v26  }
  0x77   :  { %920 = vperm.xlu0 %1847, %v806_v28  }
  0x78   :  { %925 = vperm.xlu1 %1848, %v807_v30  }
  0x7a   :  { %1801 = vmatmul.mubr.msk.bf16.gmra.mrb[28].mxu0 %vm426_vm0, %v1872_v27 }
  0x7b   :  { %1804 = vmatprep.mubr.msk.bf16.mxu0 %vm426_vm0, %v1873_v29  ;;  %1443 = vperm.xlu0 %1847, %v1440_v31  }
  0x82   :  { %1805 = vmatmul.mubr.msk.bf16.gmra.mrb[32].mxu0 %vm426_vm0, %v1874_v32  ;;  %v2292_v33 = vpop.permute.xlu0 %198 }
  0x83   :  { %v119_v34 = vpop.permute.xlu1 %118 }
  0x86   :  { %v2294_v35 = vpop.permute.xlu0 %203 }
  0x87   :  { %v124_v36 = vpop.permute.xlu1 %123 }
  0x8a   :  { %v2299_v38 = vpop.permute.xlu0 %208 }
  0x8b   :  { %v2301_v39 = vpop.permute.xlu1 %213 }
  0x8e   :  { %v129_v40 = vpop.permute.xlu0 %128 }
  0x8f   :  { %v134_v41 = vpop.permute.xlu1 %133 }
  0x92   :  { %v2303_v42 = vpop.permute.xlu0 %218 }
  0x93   :  { %v2305_v43 = vpop.permute.xlu1 %223 }
  0x96   :  { %v139_v44 = vpop.permute.xlu0 %138 }
  0x97   :  { %v144_v45 = vpop.permute.xlu1 %143 }
  0x9a   :  { %v2307_v46 = vpop.permute.xlu0 %228 }
  0x9b   :  { %v2309_v47 = vpop.permute.xlu1 %233 }
  0x9e   :  { %v149_v48 = vpop.permute.xlu0 %148 }
  0x9f   :  { %v154_v49 = vpop.permute.xlu1 %153 }
  0xa2   :  { %v2311_v50 = vpop.permute.xlu0 %238 }
  0xa3   :  { %v2313_v51 = vpop.permute.xlu1 %243 }
  0xa6   :  { %v159_v52 = vpop.permute.xlu0 %158 }
  0xa7   :  { %v164_v53 = vpop.permute.xlu1 %163 }
  0xaa   :  { %v2315_v54 = vpop.permute.xlu0 %248 }
  0xab   :  { %v2317_v55 = vpop.permute.xlu1 %253 }
  0xae   :  { %v169_v56 = vpop.permute.xlu0 %168 }
  0xaf   :  { %v174_v60 = vpop.permute.xlu1 %173 }
  0xb2   :  { %v2319_v5 = vpop.permute.xlu0 %258 }
  0xb3   :  { %v2323_v9 = vpop.permute.xlu1 %263 }
  0xb6   :  { %v179_v18 = vpop.permute.xlu0 %178 }
  0xb7   :  { %v184_v22 = vpop.permute.xlu1 %183 }
  0xba   :  { %v2331_v30 = vpop.permute.xlu0 %268 }
  0xbb   :  { %v2333_v37 = vpop.permute.xlu1 %273 }
 0x115   :  { %v1774_v57 = vpop.f32.mrb[0].mxu0 }
 0x116   :  { %v548_v58 = vadd.f32 %v1774_v57, %v129_v40  ;;  %v539_v59 = vpop.f32.mrb[1].mxu0  ;;  %v189_v57 = vpop.permute.xlu0 %188 }
 0x117   :  { %v540_v61 = vadd.f32 %v539_v59, %v119_v34  ;;  %v1775_v62 = vpop.f32.mrb[2].mxu0 }
 0x118   :  { %v551_v63 = vadd.f32 %v1775_v62, %v134_v41  ;;  %v542_v0 = vpop.f32.mrb[3].mxu0  ;;  %v684_v2 = vmax.f32 %v548_v58, 0.0  ;;  %v194_v62 = vpop.permute.xlu1 %193 }
 0x119   :  { %v543_v1 = vadd.f32 %v542_v0, %v124_v36  ;;  %v682_v6 = vmax.f32 %v540_v61, 0.0 }
 0x11a   :  { %v685_v4 = vmax.f32 %v551_v63, 0.0 }
 0x11b   :  { %v683_v7 = vmax.f32 %v543_v1, 0.0 }
 0x11c   :  { %v2321_v8 = vpack.c.bf16 %v685_v4, %v684_v2 }
 0x11d   :  { %v1778_v10 = vpop.f32.mrb[4].mxu0  ;;  %v2325_v11 = vpack.c.bf16 %v683_v7, %v682_v6 }
 0x11e   :  { %v564_v12 = vadd.f32 %v1778_v10, %v149_v48  ;;  %v555_v13 = vpop.f32.mrb[5].mxu0 }
 0x11f   :  { %v556_v14 = vadd.f32 %v555_v13, %v139_v44  ;;  %v1779_v15 = vpop.f32.mrb[6].mxu0 }
 0x120   :  { %v567_v16 = vadd.f32 %v1779_v15, %v154_v49  ;;  %v558_v17 = vpop.f32.mrb[7].mxu0  ;;  %v688_v20 = vmax.f32 %v564_v12, 0.0 }
 0x121   :  { %v559_v19 = vadd.f32 %v558_v17, %v144_v45  ;;  %v686_v23 = vmax.f32 %v556_v14, 0.0 }
 0x122   :  { %v689_v21 = vmax.f32 %v567_v16, 0.0 }
 0x123   :  { %v687_v24 = vmax.f32 %v559_v19, 0.0 }
 0x124   :  { %v2327_v25 = vpack.c.bf16 %v689_v21, %v688_v20 }
 0x125   :  { %v2329_v26 = vpack.c.bf16 %v687_v24, %v686_v23  ;;  %v1782_v27 = vpop.f32.mrb[8].mxu0 }
 0x126   :  { %v580_v28 = vadd.f32 %v1782_v27, %v169_v56  ;;  %v571_v29 = vpop.f32.mrb[9].mxu0 }
 0x127   :  { %v572_v31 = vadd.f32 %v571_v29, %v159_v52  ;;  %v1783_v32 = vpop.f32.mrb[10].mxu0 }
 0x128   :  { %v583_v34 = vadd.f32 %v1783_v32, %v174_v60  ;;  %v574_v36 = vpop.f32.mrb[11].mxu0  ;;  %v692_v41 = vmax.f32 %v580_v28, 0.0 }
 0x129   :  { %v575_v40 = vadd.f32 %v574_v36, %v164_v53  ;;  %v690_v45 = vmax.f32 %v572_v31, 0.0 }
 0x12a   :  { %v693_v44 = vmax.f32 %v583_v34, 0.0 }
 0x12b   :  { %v691_v48 = vmax.f32 %v575_v40, 0.0 }
 0x12c   :  { %v2335_v49 = vpack.c.bf16 %v693_v44, %v692_v41 }
 0x12d   :  { %v2337_v58 = vpack.c.bf16 %v691_v48, %v690_v45  ;;  %v1786_v56 = vpop.f32.mrb[12].mxu0 }
 0x12e   :  { %v596_v59 = vadd.f32 %v1786_v56, %v189_v57  ;;  %v587_v61 = vpop.f32.mrb[13].mxu0 }
 0x12f   :  { %v588_v52 = vadd.f32 %v587_v61, %v179_v18  ;;  %v1787_v63 = vpop.f32.mrb[14].mxu0 }
 0x130   :  { %v599_v60 = vadd.f32 %v1787_v63, %v194_v62  ;;  %v590_v0 = vpop.f32.mrb[15].mxu0  ;;  %v696_v2 = vmax.f32 %v596_v59, 0.0 }
 0x131   :  { %v591_v1 = vadd.f32 %v590_v0, %v184_v22  ;;  %v694_v4 = vmax.f32 %v588_v52, 0.0  ;;  %v279_v0 = vpop.permute.xlu0 %278 }
 0x132   :  { %v697_v53 = vmax.f32 %v599_v60, 0.0 }
 0x133   :  { %v695_v6 = vmax.f32 %v591_v1, 0.0 }
 0x134   :  { %v2339_v7 = vpack.c.bf16 %v697_v53, %v696_v2  ;;  %v284_v2 = vpop.permute.xlu1 %283 }
 0x135   :  { %v2341_v10 = vpack.c.bf16 %v695_v6, %v694_v4  ;;  %v1790_v12 = vpop.f32.mrb[16].mxu0 }
 0x136   :  { %v612_v13 = vadd.f32 %v1790_v12, %v2299_v38  ;;  %v603_v14 = vpop.f32.mrb[17].mxu0 }
 0x137   :  { %v604_v15 = vadd.f32 %v603_v14, %v2292_v33  ;;  %v1791_v16 = vpop.f32.mrb[18].mxu0 }
 0x138   :  { %v615_v17 = vadd.f32 %v1791_v16, %v2301_v39  ;;  %v606_v18 = vpop.f32.mrb[19].mxu0  ;;  %v700_v20 = vmax.f32 %v612_v13, 0.0  ;;  %v289_v13 = vpop.permute.xlu0 %288 }
 0x139   :  { %v607_v19 = vadd.f32 %v606_v18, %v2294_v35  ;;  %v698_v22 = vmax.f32 %v604_v15, 0.0 }
 0x13a   :  { %v701_v21 = vmax.f32 %v615_v17, 0.0 }
 0x13b   :  { %v699_v23 = vmax.f32 %v607_v19, 0.0 }
 0x13c   :  { %v727_v24 = vpack.c.bf16 %v701_v21, %v700_v20 }
 0x13d   :  { %v1794_v27 = vpop.f32.mrb[20].mxu0  ;;  %v726_v28 = vpack.c.bf16 %v699_v23, %v698_v22 }
 0x13e   :  { %v628_v29 = vadd.f32 %v1794_v27, %v2307_v46  ;;  %v619_v31 = vpop.f32.mrb[21].mxu0  ;;  %v1878_v27 = vld [vmem:[%s2597_s3 + $0x1c] ss:$12 sps:$4 sm:$0xff]  }
 0x13f   :  { %v620_v38 = vadd.f32 %v619_v31, %v2303_v42  ;;  %v1795_v32 = vpop.f32.mrb[22].mxu0  ;;  %1654 = vmatprep.subr.bf16.mxu1 %v726_v28  ;;  %v1884_v31 = vld [vmem:[%s2597_s3 + $0x4c] ss:$12 sps:$4 sm:$0xff]  }
 0x140   :  { %v631_v33 = vadd.f32 %v1795_v32, %v2309_v47  ;;  %v622_v39 = vpop.f32.mrb[23].mxu0  ;;  %1655 = vmatpush3.bf16.msra.mxu1 %v2325_v11  ;;  %v704_v34 = vmax.f32 %v628_v29, 0.0  ;;  %v1881_v29 = vld [vmem:[%s2597_s3 + $0x34] ss:$12 sps:$4 sm:$0xff]   ;;  %v1887_v32 = vld [vmem:[%s2597_s3 + $0x64] ss:$12 sps:$4 sm:$0xff]  }
 0x141   :  { %v623_v35 = vadd.f32 %v622_v39, %v2305_v43  ;;  %1656 = vmatprep.subr.bf16.mxu1 %v727_v24  ;;  %v702_v40 = vmax.f32 %v620_v38, 0.0  ;;  %v1886_v38 = vld [vmem:[%s2597_s3 + $0x48] ss:$12 sps:$4 sm:$0xff]  }
 0x142   :  { %v705_v36 = vmax.f32 %v631_v33, 0.0  ;;  %v1889_v33 = vld [vmem:[%s2597_s3 + $0x60] ss:$12 sps:$4 sm:$0xff]   ;;  %v1890_v39 = vld [vmem:[%s2597_s3 + $0x7c] ss:$12 sps:$4 sm:$0xff]  }
 0x143   :  { %v703_v41 = vmax.f32 %v623_v35, 0.0  ;;  %v1892_v35 = vld [vmem:[%s2597_s3 + $0x78] ss:$12 sps:$4 sm:$0xff]  }
 0x144   :  { %v729_v44 = vpack.c.bf16 %v705_v36, %v704_v34  ;;  %1657 = vmatpush3.bf16.msra.mxu1 %v2321_v8  ;;  %v1893_v34 = vld [vmem:[%s2597_s3 + $0x94] ss:$12 sps:$4 sm:$0xff]   ;;  %v1895_v36 = vld [vmem:[%s2597_s3 + $0x90] ss:$12 sps:$4 sm:$0xff]  }
 0x145   :  { %v728_v46 = vpack.c.bf16 %v703_v41, %v702_v40  ;;  %v1798_v45 = vpop.f32.mrb[24].mxu0  ;;  %v1896_v40 = vld [vmem:[%s2597_s3 + $0xac] ss:$12 sps:$4 sm:$0xff]   ;;  %v1898_v41 = vld [vmem:[%s2597_s3 + $0xa8] ss:$12 sps:$4 sm:$0xff]  }
 0x146   :  { %v644_v42 = vadd.f32 %v1798_v45, %v2315_v54  ;;  %v635_v48 = vpop.f32.mrb[25].mxu0  ;;  %v1902_v45 = vld [vmem:[%s2597_s3 + $0xdc] ss:$12 sps:$4 sm:$0xff]  }
 0x147   :  { %v636_v47 = vadd.f32 %v635_v48, %v2311_v50  ;;  %v1799_v57 = vpop.f32.mrb[26].mxu0  ;;  %1658 = vmatprep.subr.bf16.mxu1 %v728_v46  ;;  %v1901_v46 = vld [vmem:[%s2597_s3 + $0xc0] ss:$12 sps:$4 sm:$0xff]  }
 0x148   :  { %v647_v11 = vadd.f32 %v1799_v57, %v2317_v55  ;;  %v638_v43 = vpop.f32.mrb[27].mxu0  ;;  %1659 = vmatpush3.bf16.msra.mxu1 %v2329_v26  ;;  %v708_v59 = vmax.f32 %v644_v42, 0.0  ;;  %v1904_v42 = vld [vmem:[%s2597_s3 + $0xd8] ss:$12 sps:$4 sm:$0xff]   ;;  %v1905_v48 = vld [vmem:[%s2597_s3 + $0xf4] ss:$12 sps:$4 sm:$0xff]  }
 0x149   :  { %v639_v56 = vadd.f32 %v638_v43, %v2313_v51  ;;  %1660 = vmatprep.subr.bf16.mxu1 %v729_v44  ;;  %v706_v8 = vmax.f32 %v636_v47, 0.0  ;;  %v1899_v44 = vld [vmem:[%s2597_s3 + $0xc4] ss:$12 sps:$4 sm:$0xff]   ;;  %v1908_v57 = vld [vmem:[%s2597_s3 + $0x10c] ss:$12 sps:$4 sm:$0xff]  }
 0x14a   :  { %v709_v61 = vmax.f32 %v647_v11, 0.0  ;;  %v1907_v47 = vld [vmem:[%s2597_s3 + $0xf0] ss:$12 sps:$4 sm:$0xff]   ;;  %v1910_v11 = vld [vmem:[%s2597_s3 + $0x108] ss:$12 sps:$4 sm:$0xff]  }
 0x14b   :  { %v707_v62 = vmax.f32 %v639_v56, 0.0  ;;  %v1911_v43 = vld [vmem:[%s2597_s3 + $0x8] ss:$12 sps:$4 sm:$0xff]   ;;  %v1912_v56 = vld [vmem:[%s2597_s3 + $0x20] ss:$12 sps:$4 sm:$0xff]  }
 0x14c   :  { %v731_v52 = vpack.c.bf16 %v709_v61, %v708_v59  ;;  %1661 = vmatpush3.bf16.msra.mxu1 %v2327_v25  ;;  %v1913_v59 = vld [vmem:[%s2597_s3 + $0x38] ss:$12 sps:$4 sm:$0xff]   ;;  %v1914_v61 = vld [vmem:[%s2597_s3 + $0x50] ss:$12 sps:$4 sm:$0xff]  }
 0x14d   :  { %v730_v54 = vpack.c.bf16 %v707_v62, %v706_v8  ;;  %v1802_v63 = vpop.f32.mrb[28].mxu0  ;;  %v1915_v8 = vld [vmem:[%s2597_s3 + $0x68] ss:$12 sps:$4 sm:$0xff]   ;;  %v1916_v62 = vld [vmem:[%s2597_s3 + $0x80] ss:$12 sps:$4 sm:$0xff]  }
 0x14e   :  { %v660_v50 = vadd.f32 %v1802_v63, %v2331_v30  ;;  %v651_v60 = vpop.f32.mrb[29].mxu0  ;;  %v1919_v63 = vld [vmem:[%s2597_s3 + $0xc8] ss:$12 sps:$4 sm:$0xff]  }
 0x14f   :  { %v652_v55 = vadd.f32 %v651_v60, %v2319_v5  ;;  %v1803_v1 = vpop.f32.mrb[30].mxu0  ;;  %1662 = vmatprep.subr.bf16.mxu1 %v730_v54  ;;  %v1918_v54 = vld [vmem:[%s2597_s3 + $0xb0] ss:$12 sps:$4 sm:$0xff]   ;;  %v1921_v60 = vld [vmem:[%s2597_s3 + $0xf8] ss:$12 sps:$4 sm:$0xff]  }
 0x150   :  { %v663_v51 = vadd.f32 %v1803_v1, %v2333_v37  ;;  %v654_v26 = vpop.f32.mrb[31].mxu0  ;;  %1663 = vmatpush3.bf16.msra.mxu1 %v2337_v58  ;;  %v712_v25 = vmax.f32 %v660_v50, 0.0  ;;  %v294_v37 = vpop.permute.xlu1 %293  ;;  %v1920_v50 = vld [vmem:[%s2597_s3 + $0xe0] ss:$12 sps:$4 sm:$0xff]  }
 0x151   :  { %v655_v53 = vadd.f32 %v654_v26, %v2323_v9  ;;  %1664 = vmatprep.subr.bf16.mxu1 %v731_v52  ;;  %v710_v6 = vmax.f32 %v652_v55, 0.0  ;;  %v1917_v52 = vld [vmem:[%s2597_s3 + $0x98] ss:$12 sps:$4 sm:$0xff]  }
 0x152   :  { %v713_v4 = vmax.f32 %v663_v51, 0.0 }
 0x153   :  { %v711_v12 = vmax.f32 %v655_v53, 0.0 }
 0x154   :  { %v733_v30 = vpack.c.bf16 %v713_v4, %v712_v25  ;;  %1665 = vmatpush3.bf16.msra.mxu1 %v2335_v49  ;;  %v1875_v49 = vld [vmem:[%s2597_s3] ss:$12 sps:$4 sm:$0xff]  }
 0x155   :  { %v732_v5 = vpack.c.bf16 %v711_v12, %v710_v6  ;;  %v1806_v14 = vpop.f32.mrb[32].mxu0 }
 0x156   :  { %v676_v15 = vadd.f32 %v1806_v14, %v289_v13  ;;  %v667_v16 = vpop.f32.mrb[33].mxu0  ;;  %v1952_v14 = vmov 1966171168  }
 0x157   :  { %v668_v17 = vadd.f32 %v667_v16, %v279_v0  ;;  %v1807_v18 = vpop.f32.mrb[34].mxu0  ;;  %1666 = vmatprep.subr.bf16.mxu1 %v732_v5  ;;  %v1922_v0 = vld [vmem:[%s2597_s3 + $0x110] ss:$12 sps:$4 sm:$0xff]   ;;  %v1458_v16 = vlaneseq }
 0x158   :  { %v679_v58 = vadd.f32 %v1807_v18, %v294_v37  ;;  %v670_v19 = vpop.f32.mrb[35].mxu0  ;;  %1667 = vmatpush3.bf16.msra.mxu1 %v2341_v10  ;;  %v716_v20 = vmax.f32 %v676_v15, 0.0  ;;  %v1880_v10 = vld [vmem:[%s2597_s3 + $0x18] ss:$12 sps:$4 sm:$0xff]   ;;  %v1456_v15 = vunpack.c.l.s4 %v1952_v14 }
 0x159   :  { %v671_v9 = vadd.f32 %v670_v19, %v284_v2  ;;  %1668 = vmatprep.subr.bf16.mxu1 %v733_v30  ;;  %v714_v22 = vmax.f32 %v668_v17, 0.0  ;;  %v1459_v19 = vshrl.u32 %v1458_v16, 7 }
 0x15a   :  { %v717_v21 = vmax.f32 %v679_v58, 0.0  ;;  %v1457_v58 = vunpack.c.0.s8 %v1456_v15 }
 0x15b   :  { %v715_v23 = vmax.f32 %v671_v9, 0.0 }
 0x15c   :  { %v735_v24 = vpack.c.bf16 %v717_v21, %v716_v20  ;;  %1669 = vmatpush3.bf16.msra.mxu1 %v2339_v7  ;;  %v1883_v7 = vld [vmem:[%s2597_s3 + $0x30] ss:$12 sps:$4 sm:$0xff]   ;;  %v2497_v20 = vld.sshfl [vmem:[%s2599_s5] sm:$0x11 pattern:$0x75316420] }
 0x15d   :  { %v734_v28 = vpack.c.bf16 %v715_v23, %v714_v22  ;;  %v1454_v22 = vcombine.high %v2497_v20, %v2497_v20  ;;  %v2503_v23 = vsub.s32 %v1457_v58, %v1459_v19  ;;  %s1953_s5 = smov [#allocation2]  }
 0x15e   :  { %s1526_s19 = sshll.u32 %s1953_s5, 4  ;;  %s1527_s19 = int_to_ptr.vmem [resolvable:$true] %s1526_s19 }
 0x15f   :  { %1178 = vmatmul.mubr.bf16.vlgmr.msra.gmra.mrb[0].mxu1 %v1875_v49  ;;  %1808 = vmatprep.subr.bf16.mxu1 %v734_v28  ;;  %v1461_v49 = vrot.slane %v2497_v20, %v2503_v23  ;;  %s1927_s20 = scalar_lea.vmem %s1527_s19, 32  ;;  %p1932_p1 = scmp.lt.s32.totalorder %s1527_s19, %s1527_s19 }
 0x160   :  { %1809 = vmatpush3.bf16.msra.mxu1 %v734_v28  ;;  %1185 = vmatprep.mubr.bf16.mxu1 %v1878_v27  ;;  %p1928_p0 = scmp.ne.s32.totalorder %s1527_s19, %s1927_s20  ;;  %p1933_p2 = scmp.lt.s32.totalorder %s1927_s20, %s1927_s20 }
 0x161   :  { %1810 = vmatprep.subr.bf16.mxu1 %v735_v24 }
 0x162   :  { %p1934_p3 = por %p1933_p2, %p1932_p1 }
 0x164   :  { %1811 = vmatpush3.bf16.msra.mxu1 %v735_v24  ;;  %v1468_v24 = vrot.slane %v1454_v22, %v2503_v23  ;;  %p1935_p4 = pnand %p1934_p3, %p1928_p0 }
 0x166   :  { %1627 = vmatprep.mubr.msk.bf16.mxu0 %vm1470_vm2, %v1468_v24 }
 0x167   :  { %1186 = vmatmul.mubr.bf16.gmra.mrb[4].mxu1 %v1880_v10 }
 0x168   :  { %1193 = vmatprep.mubr.bf16.mxu1 %v1881_v29 }
 0x16f   :  { %1194 = vmatmul.mubr.bf16.gmra.mrb[8].mxu1 %v1883_v7 }
 0x170   :  { %1201 = vmatprep.mubr.bf16.mxu1 %v1884_v31 }
 0x177   :  { %1202 = vmatmul.mubr.bf16.gmra.mrb[12].mxu1 %v1886_v38 }
 0x178   :  { %1209 = vmatprep.mubr.bf16.mxu1 %v1887_v32 }
 0x17f   :  { %1210 = vmatmul.mubr.bf16.gmra.mrb[16].mxu1 %v1889_v33 }
 0x180   :  { %1217 = vmatprep.mubr.bf16.mxu1 %v1890_v39 }
 0x187   :  { %1218 = vmatmul.mubr.bf16.gmra.mrb[20].mxu1 %v1892_v35 }
 0x188   :  { %1225 = vmatprep.mubr.bf16.mxu1 %v1893_v34 }
 0x18f   :  { %1226 = vmatmul.mubr.bf16.gmra.mrb[24].mxu1 %v1895_v36 }
 0x190   :  { %1233 = vmatprep.mubr.bf16.mxu1 %v1896_v40 }
 0x197   :  { %1234 = vmatmul.mubr.bf16.gmra.mrb[28].mxu1 %v1898_v41 }
 0x198   :  { %1241 = vmatprep.mubr.bf16.mxu1 %v1899_v44 }
 0x19f   :  { %1242 = vmatmul.mubr.bf16.gmra.mrb[32].mxu1 %v1901_v46 }
 0x1a0   :  { %1249 = vmatprep.mubr.bf16.mxu1 %v1902_v45 }
 0x1a7   :  { %1250 = vmatmul.mubr.bf16.gmra.mrb[36].mxu1 %v1904_v42 }
 0x1a8   :  { %1257 = vmatprep.mubr.bf16.mxu1 %v1905_v48 }
 0x1af   :  { %1258 = vmatmul.mubr.bf16.gmra.mrb[40].mxu1 %v1907_v47 }
 0x1b0   :  { %1265 = vmatprep.mubr.bf16.mxu1 %v1908_v57 }
 0x1b7   :  { %1266 = vmatmul.mubr.bf16.gmra.mrb[44].mxu1 %v1910_v11 }
 0x1b8   :  { %1812 = vmatprep.mubr.msk.bf16.mxu1 %vm1108_vm1, %v1911_v43 }
 0x1bf   :  { %1813 = vmatmul.mubr.msk.bf16.vlgmr.msra.gmra.mrb[48].mxu1 %vm1108_vm1, %v1912_v56 }
 0x1c0   :  { %1816 = vmatprep.mubr.msk.bf16.mxu1 %vm1108_vm1, %v1913_v59 }
 0x1c7   :  { %1817 = vmatmul.mubr.msk.bf16.gmra.mrb[52].mxu1 %vm1108_vm1, %v1914_v61 }
 0x1c8   :  { %1820 = vmatprep.mubr.msk.bf16.mxu1 %vm1108_vm1, %v1915_v8 }
 0x1cf   :  { %1821 = vmatmul.mubr.msk.bf16.gmra.mrb[56].mxu1 %vm1108_vm1, %v1916_v62 }
 0x1d0   :  { %1824 = vmatprep.mubr.msk.bf16.mxu1 %vm1108_vm1, %v1917_v52 }
 0x1d7   :  { %1825 = vmatmul.mubr.msk.bf16.gmra.mrb[60].mxu1 %vm1108_vm1, %v1918_v54 }
 0x1d8   :  { %1828 = vmatprep.mubr.msk.bf16.mxu1 %vm1108_vm1, %v1919_v63 }
 0x1df   :  { %1829 = vmatmul.mubr.msk.bf16.gmra.mrb[64].mxu1 %vm1108_vm1, %v1920_v50 }
 0x1e0   :  { %1832 = vmatprep.mubr.msk.bf16.mxu1 %vm1108_vm1, %v1921_v60 }
 0x1e7   :  { %1833 = vmatmul.mubr.msk.bf16.gmra.mrb[68].mxu1 %vm1108_vm1, %v1922_v0 }
 0x232   :  { %v1670_v55 = vpop.f32.mrb[0].mxu1 }
 0x233   :  { %v1671_v1 = vpop.f32.mrb[1].mxu1 }
 0x234   :  { %v2484_v51 = vadd.f32 %v1671_v1, %v1670_v55  ;;  %v1673_v26 = vpop.f32.mrb[2].mxu1  ;;  %v811_v55 = vpop.permute.xlu0 %810 }
 0x235   :  { %v1674_v2 = vpop.f32.mrb[3].mxu1 }
 0x236   :  { %v2486_v53 = vadd.f32 %v1674_v2, %v1673_v26  ;;  %v816_v26 = vpop.permute.xlu1 %815 }
 0x23a   :  { %v1676_v25 = vpop.f32.mrb[4].mxu1  ;;  %v826_v14 = vpop.permute.xlu1 %825 }
 0x23b   :  { %v1677_v4 = vpop.f32.mrb[5].mxu1 }
 0x23c   :  { %v2488_v6 = vadd.f32 %v1677_v4, %v1676_v25  ;;  %v1679_v12 = vpop.f32.mrb[6].mxu1  ;;  %v821_v4 = vpop.permute.xlu0 %820 }
 0x23d   :  { %v1680_v30 = vpop.f32.mrb[7].mxu1 }
 0x23e   :  { %v2490_v13 = vadd.f32 %v1680_v30, %v1679_v12  ;;  %v836_v58 = vpop.permute.xlu1 %835 }
 0x240   :  { %v831_v16 = vpop.permute.xlu0 %830 }
 0x242   :  { %v1682_v5 = vpop.f32.mrb[8].mxu1 }
 0x243   :  { %v1683_v37 = vpop.f32.mrb[9].mxu1 }
 0x244   :  { %v2492_v17 = vadd.f32 %v1683_v37, %v1682_v5  ;;  %v1685_v18 = vpop.f32.mrb[10].mxu1 }
 0x245   :  { %v1686_v9 = vpop.f32.mrb[11].mxu1 }
 0x246   :  { %v2499_v21 = vadd.f32 %v1686_v9, %v1685_v18 }
 0x24a   :  { %v1688_v27 = vpop.f32.mrb[12].mxu1 }
 0x24b   :  { %v1689_v28 = vpop.f32.mrb[13].mxu1 }
 0x24c   :  { %v2508_v10 = vadd.f32 %v1689_v28, %v1688_v27  ;;  %v1691_v29 = vpop.f32.mrb[14].mxu1  ;;  %v841_v27 = vpop.permute.xlu0 %840 }
 0x24d   :  { %v1692_v7 = vpop.f32.mrb[15].mxu1  ;;  %v846_v28 = vpop.permute.xlu1 %845 }
 0x24e   :  { %v2510_v31 = vadd.f32 %v1692_v7, %v1691_v29 }
 0x252   :  { %v1694_v38 = vpop.f32.mrb[16].mxu1 }
 0x253   :  { %v1695_v32 = vpop.f32.mrb[17].mxu1 }
 0x254   :  { %v2512_v33 = vadd.f32 %v1695_v32, %v1694_v38  ;;  %v1697_v39 = vpop.f32.mrb[18].mxu1 }
 0x255   :  { %v1698_v35 = vpop.f32.mrb[19].mxu1 }
 0x256   :  { %v2514_v34 = vadd.f32 %v1698_v35, %v1697_v39  ;;  %v851_v35 = vpop.permute.xlu0 %850 }
 0x25a   :  { %v1700_v36 = vpop.f32.mrb[20].mxu1 }
 0x25b   :  { %v1701_v40 = vpop.f32.mrb[21].mxu1 }
 0x25c   :  { %v2516_v41 = vadd.f32 %v1701_v40, %v1700_v36  ;;  %v1703_v44 = vpop.f32.mrb[22].mxu1  ;;  %v856_v40 = vpop.permute.xlu1 %855 }
 0x25d   :  { %v1704_v46 = vpop.f32.mrb[23].mxu1 }
 0x25e   :  { %v2518_v45 = vadd.f32 %v1704_v46, %v1703_v44  ;;  %v1188_v44 = vadd.f32 %v2488_v6, %v821_v4 }
 0x262   :  { %v1706_v42 = vpop.f32.mrb[24].mxu1 }
 0x263   :  { %v1707_v48 = vpop.f32.mrb[25].mxu1 }
 0x264   :  { %v2520_v47 = vadd.f32 %v1707_v48, %v1706_v42  ;;  %v1709_v57 = vpop.f32.mrb[26].mxu1  ;;  %v1180_v42 = vadd.f32 %v2484_v51, %v811_v55  ;;  %v1204_v51 = vadd.f32 %v2508_v10, %v841_v27 }
 0x265   :  { %v1710_v11 = vpop.f32.mrb[27].mxu1 }
 0x266   :  { %v2522_v43 = vadd.f32 %v1710_v11, %v1709_v57  ;;  %v1191_v11 = vadd.f32 %v2490_v13, %v826_v14  ;;  %v1196_v13 = vadd.f32 %v2492_v17, %v831_v16 }
 0x26a   :  { %v1712_v56 = vpop.f32.mrb[28].mxu1 }
 0x26b   :  { %v1713_v59 = vpop.f32.mrb[29].mxu1 }
 0x26c   :  { %v2524_v61 = vadd.f32 %v1713_v59, %v1712_v56  ;;  %v1715_v8 = vpop.f32.mrb[30].mxu1  ;;  %v861_v56 = vpop.permute.xlu0 %860 }
 0x26d   :  { %v1716_v62 = vpop.f32.mrb[31].mxu1 }
 0x26e   :  { %v2526_v52 = vadd.f32 %v1716_v62, %v1715_v8  ;;  %v1183_v62 = vadd.f32 %v2486_v53, %v816_v26  ;;  %v1207_v53 = vadd.f32 %v2510_v31, %v846_v28  ;;  %v1220_v31 = vadd.f32 %v2516_v41, %v861_v56 }
 0x270   :  { %v871_v55 = vpop.permute.xlu0 %870 }
 0x272   :  { %v1718_v54 = vpop.f32.mrb[32].mxu1 }
 0x273   :  { %v1719_v63 = vpop.f32.mrb[33].mxu1 }
 0x274   :  { %v2528_v50 = vadd.f32 %v1719_v63, %v1718_v54  ;;  %v1721_v60 = vpop.f32.mrb[34].mxu1 }
 0x275   :  { %v1722_v0 = vpop.f32.mrb[35].mxu1 }
 0x276   :  { %v2530_v1 = vadd.f32 %v1722_v0, %v1721_v60  ;;  %v866_v60 = vpop.permute.xlu1 %865 }
 0x27a   :  { %v1724_v2 = vpop.f32.mrb[36].mxu1  ;;  %v876_v26 = vpop.permute.xlu1 %875 }
 0x27b   :  { %v1725_v25 = vpop.f32.mrb[37].mxu1 }
 0x27c   :  { %v2532_v12 = vadd.f32 %v1725_v25, %v1724_v2  ;;  %v1727_v30 = vpop.f32.mrb[38].mxu1 }
 0x27d   :  { %v1728_v5 = vpop.f32.mrb[39].mxu1 }
 0x27e   :  { %v2534_v15 = vadd.f32 %v1728_v5, %v1727_v30  ;;  %v886_v28 = vpop.permute.xlu1 %885 }
 0x282   :  { %v1730_v37 = vpop.f32.mrb[40].mxu1 }
 0x283   :  { %v1731_v18 = vpop.f32.mrb[41].mxu1 }
 0x284   :  { %v2536_v19 = vadd.f32 %v1731_v18, %v1730_v37  ;;  %v1733_v9 = vpop.f32.mrb[42].mxu1 }
 0x285   :  { %v1734_v22 = vpop.f32.mrb[43].mxu1 }
 0x286   :  { %v2538_v24 = vadd.f32 %v1734_v22, %v1733_v9 }
 0x28a   :  { %v1736_v29 = vpop.f32.mrb[44].mxu1 }
 0x28b   :  { %v1737_v7 = vpop.f32.mrb[45].mxu1 }
 0x28c   :  { %v2540_v38 = vadd.f32 %v1737_v7, %v1736_v29  ;;  %v1739_v32 = vpop.f32.mrb[46].mxu1  ;;  %v1199_v29 = vadd.f32 %v2499_v21, %v836_v58  ;;  %v1212_v21 = vadd.f32 %v2512_v33, %v851_v35 }
 0x28d   :  { %v1740_v39 = vpop.f32.mrb[47].mxu1 }
 0x28e   :  { %v2542_v36 = vadd.f32 %v1740_v39, %v1739_v32 }
 0x292   :  { %v1814_v46 = vpop.f32.mrb[48].mxu1 }
 0x293   :  { %v1317_v48 = vadd.f32 %v1814_v46, %v1188_v44  ;;  %v1308_v57 = vpop.f32.mrb[49].mxu1  ;;  %v881_v44 = vpop.permute.xlu0 %880 }
 0x294   :  { %v1309_v59 = vadd.f32 %v1308_v57, %v1180_v42  ;;  %v1815_v8 = vpop.f32.mrb[50].mxu1 }
 0x295   :  { %v1320_v54 = vadd.f32 %v1815_v8, %v1191_v11  ;;  %v1311_v63 = vpop.f32.mrb[51].mxu1  ;;  %v1405_v2 = vmax.f32 %v1317_v48, 0.0  ;;  %v1223_v11 = vadd.f32 %v2518_v45, %v866_v60  ;;  %v1236_v45 = vadd.f32 %v2524_v61, %v881_v44 }
 0x296   :  { %v1312_v0 = vadd.f32 %v1311_v63, %v1183_v62  ;;  %v1403_v30 = vmax.f32 %v1309_v59, 0.0  ;;  %v1215_v62 = vadd.f32 %v2514_v34, %v856_v40  ;;  %v1228_v34 = vadd.f32 %v2520_v47, %v871_v55 }
 0x297   :  { %v1406_v25 = vmax.f32 %v1320_v54, 0.0  ;;  %v891_v41 = vpop.permute.xlu0 %890 }
 0x298   :  { %v1404_v6 = vmax.f32 %v1312_v0, 0.0 }
 0x299   :  { %v1428_v4 = vpack.c.bf16 %v1406_v25, %v1405_v2  ;;  %v896_v25 = vpop.permute.xlu1 %895 }
 0x29a   :  { %v1427_v5 = vpack.c.bf16 %v1404_v6, %v1403_v30  ;;  %v1818_v37 = vpop.f32.mrb[52].mxu1 }
 0x29b   :  { %v1333_v14 = vadd.f32 %v1818_v37, %v1204_v51  ;;  %v1324_v18 = vpop.f32.mrb[53].mxu1  ;;  %v1239_v51 = vadd.f32 %v2526_v52, %v886_v28 }
 0x29c   :  { %v1325_v9 = vadd.f32 %v1324_v18, %v1196_v13  ;;  %v1819_v22 = vpop.f32.mrb[54].mxu1  ;;  %1475 = vmatpush1.bf16.msra.mxu0 %v1427_v5  ;;  %v901_v5 = vpop.permute.xlu0 %900 }
 0x29d   :  { %v1336_v7 = vadd.f32 %v1819_v22, %v1207_v53  ;;  %v1327_v32 = vpop.f32.mrb[55].mxu1  ;;  %1476 = vmatprep.subr.bf16.mxu0 %v1951_v3  ;;  %v1409_v27 = vmax.f32 %v1333_v14, 0.0  ;;  %v1231_v14 = vadd.f32 %v2522_v43, %v876_v26  ;;  %v906_v61 = vpop.permute.xlu1 %905  ;;  %v1252_v52 = vadd.f32 %v2532_v12, %v901_v5 }
 0x29e   :  { %v1328_v10 = vadd.f32 %v1327_v32, %v1199_v29  ;;  %v1407_v46 = vmax.f32 %v1325_v9, 0.0  ;;  %v1244_v43 = vadd.f32 %v2528_v50, %v891_v41  ;;  %v1255_v44 = vadd.f32 %v2534_v15, %v906_v61 }
 0x29f   :  { %v1410_v39 = vmax.f32 %v1336_v7, 0.0 }
 0x2a0   :  { %v1408_v17 = vmax.f32 %v1328_v10, 0.0  ;;  %1477 = vmatpush1.bf16.msra.mxu0 %v1428_v4  ;;  %v911_v32 = vpop.permute.xlu0 %910 }
 0x2a1   :  { %v1430_v16 = vpack.c.bf16 %v1410_v39, %v1409_v27  ;;  %1478 = vmatprep.subr.bf16.mxu0 %v1951_v3 }
 0x2a2   :  { %v1429_v42 = vpack.c.bf16 %v1408_v17, %v1407_v46  ;;  %v1822_v48 = vpop.f32.mrb[56].mxu1  ;;  %v916_v46 = vpop.permute.xlu1 %915 }
 0x2a3   :  { %v1349_v58 = vadd.f32 %v1822_v48, %v1220_v31  ;;  %v1340_v57 = vpop.f32.mrb[57].mxu1  ;;  %v1247_v31 = vadd.f32 %v2530_v1, %v896_v25  ;;  %v1260_v1 = vadd.f32 %v2536_v19, %v911_v32 }
 0x2a4   :  { %v1341_v59 = vadd.f32 %v1340_v57, %v1212_v21  ;;  %v1823_v8 = vpop.f32.mrb[58].mxu1  ;;  %1479 = vmatpush1.bf16.msra.mxu0 %v1429_v42 }
 0x2a5   :  { %v1352_v54 = vadd.f32 %v1823_v8, %v1223_v11  ;;  %v1343_v63 = vpop.f32.mrb[59].mxu1  ;;  %1480 = vmatprep.subr.bf16.mxu0 %v1951_v3  ;;  %v1413_v0 = vmax.f32 %v1349_v58, 0.0  ;;  %v921_v58 = vpop.permute.xlu0 %920 }
 0x2a6   :  { %v1344_v56 = vadd.f32 %v1343_v63, %v1215_v62  ;;  %v1411_v30 = vmax.f32 %v1341_v59, 0.0  ;;  %v1268_v15 = vadd.f32 %v2540_v38, %v921_v58  ;;  %v926_v59 = vpop.permute.xlu1 %925 }
 0x2a7   :  { %v1414_v2 = vmax.f32 %v1352_v54, 0.0  ;;  %v1271_v41 = vadd.f32 %v2542_v36, %v926_v59 }
 0x2a8   :  { %v1412_v33 = vmax.f32 %v1344_v56, 0.0  ;;  %1481 = vmatpush1.bf16.msra.mxu0 %v1430_v16 }
 0x2a9   :  { %v1432_v35 = vpack.c.bf16 %v1414_v2, %v1413_v0  ;;  %1482 = vmatprep.subr.bf16.mxu0 %v1951_v3  ;;  %v1263_v2 = vadd.f32 %v2538_v24, %v916_v46  ;;  %v1444_v24 = vpop.permute.xlu0 %1443 }
 0x2aa   :  { %v1431_v60 = vpack.c.bf16 %v1412_v33, %v1411_v30  ;;  %v1826_v6 = vpop.f32.mrb[60].mxu1 }
 0x2ab   :  { %v1365_v40 = vadd.f32 %v1826_v6, %v1236_v45  ;;  %v1356_v4 = vpop.f32.mrb[61].mxu1 }
 0x2ac   :  { %v1357_v37 = vadd.f32 %v1356_v4, %v1228_v34  ;;  %v1827_v13 = vpop.f32.mrb[62].mxu1  ;;  %1483 = vmatpush1.bf16.msra.mxu0 %v1431_v60 }
 0x2ad   :  { %v1368_v18 = vadd.f32 %v1827_v13, %v1239_v51  ;;  %v1359_v53 = vpop.f32.mrb[63].mxu1  ;;  %1484 = vmatprep.subr.bf16.mxu0 %v1951_v3  ;;  %v1417_v22 = vmax.f32 %v1365_v40, 0.0 }
 0x2ae   :  { %v1360_v9 = vadd.f32 %v1359_v53, %v1231_v14  ;;  %v1415_v7 = vmax.f32 %v1357_v37, 0.0 }
 0x2af   :  { %v1418_v29 = vmax.f32 %v1368_v18, 0.0 }
 0x2b0   :  { %v1416_v47 = vmax.f32 %v1360_v9, 0.0  ;;  %1485 = vmatpush1.bf16.msra.mxu0 %v1432_v35 }
 0x2b1   :  { %v1434_v55 = vpack.c.bf16 %v1418_v29, %v1417_v22  ;;  %1486 = vmatprep.subr.bf16.mxu0 %v1951_v3 }
 0x2b2   :  { %v1433_v10 = vpack.c.bf16 %v1416_v47, %v1415_v7  ;;  %v1830_v27 = vpop.f32.mrb[64].mxu1 }
 0x2b3   :  { %v1381_v26 = vadd.f32 %v1830_v27, %v1252_v52  ;;  %v1372_v39 = vpop.f32.mrb[65].mxu1 }
 0x2b4   :  { %v1373_v17 = vadd.f32 %v1372_v39, %v1244_v43  ;;  %v1831_v16 = vpop.f32.mrb[66].mxu1  ;;  %1487 = vmatpush1.bf16.msra.mxu0 %v1433_v10 }
 0x2b5   :  { %v1384_v28 = vadd.f32 %v1831_v16, %v1255_v44  ;;  %v1375_v42 = vpop.f32.mrb[67].mxu1  ;;  %1488 = vmatprep.subr.bf16.mxu0 %v1951_v3  ;;  %v1421_v48 = vmax.f32 %v1381_v26, 0.0 }
 0x2b6   :  { %v1376_v12 = vadd.f32 %v1375_v42, %v1247_v31  ;;  %v1419_v57 = vmax.f32 %v1373_v17, 0.0 }
 0x2b7   :  { %v1422_v21 = vmax.f32 %v1384_v28, 0.0 }
 0x2b8   :  { %v1420_v50 = vmax.f32 %v1376_v12, 0.0  ;;  %1489 = vmatpush1.bf16.msra.mxu0 %v1434_v55 }
 0x2b9   :  { %v1436_v11 = vpack.c.bf16 %v1422_v21, %v1421_v48  ;;  %1490 = vmatprep.subr.bf16.mxu0 %v1951_v3 }
 0x2ba   :  { %v1435_v8 = vpack.c.bf16 %v1420_v50, %v1419_v57  ;;  %v1834_v62 = vpop.f32.mrb[68].mxu1 }
 0x2bb   :  { %v1397_v54 = vadd.f32 %v1834_v62, %v1268_v15  ;;  %v1388_v63 = vpop.f32.mrb[69].mxu1 }
 0x2bc   :  { %v1389_v56 = vadd.f32 %v1388_v63, %v1260_v1  ;;  %v1835_v0 = vpop.f32.mrb[70].mxu1  ;;  %1491 = vmatpush1.bf16.msra.mxu0 %v1435_v8 }
 0x2bd   :  { %v1400_v25 = vadd.f32 %v1835_v0, %v1271_v41  ;;  %v1391_v30 = vpop.f32.mrb[71].mxu1  ;;  %1492 = vmatprep.subr.bf16.mxu0 %v1951_v3  ;;  %v1425_v33 = vmax.f32 %v1397_v54, 0.0 }
 0x2be   :  { %v1392_v38 = vadd.f32 %v1391_v30, %v1263_v2  ;;  %v1423_v45 = vmax.f32 %v1389_v56, 0.0 }
 0x2bf   :  { %v1426_v35 = vmax.f32 %v1400_v25, 0.0 }
 0x2c0   :  { %v1424_v60 = vmax.f32 %v1392_v38, 0.0  ;;  %1493 = vmatpush1.bf16.msra.mxu0 %v1436_v11 }
 0x2c1   :  { %v1438_v19 = vpack.c.bf16 %v1426_v35, %v1425_v33  ;;  %1494 = vmatprep.subr.bf16.mxu0 %v1951_v3 }
 0x2c2   :  { %v1437_v6 = vpack.c.bf16 %v1424_v60, %v1423_v45 }
 0x2c4   :  { %1495 = vmatpush1.bf16.msra.mxu0 %v1437_v6 }
 0x2c5   :  { %1496 = vmatprep.subr.bf16.mxu0 %v1951_v3 }
 0x2c8   :  { %1497 = vmatpush1.bf16.msra.mxu0 %v1438_v19 }
 0x2cb   :  { %1507 = vmatmul.mubr.bf16.vlgmr.msra.gmra.mrb[36].mxu0 %v1461_v49 }
 0x39e   :  { %v1508_v36 = vpop.f32.mrb[36].mxu0 }
 0x39f   :  { %v1509_v34 = vadd.f32 %v1508_v36, %v1444_v24  ;;  %v1510_v40 = vpop.f32.mrb[37].mxu0 }
 0x3a0   :  { %v1511_v4 = vpop.f32.mrb[38].mxu0 }
 0x3a1   :  { %v1514_v51 = vsub.f32 0.0, %v1509_v34  ;;  %v1512_v5 = vpop.f32.mrb[39].mxu0 }
 0x3a3   :  { %v1515_v37 = vmul.f32 1.442695, %v1514_v51 }
 0x3a5   :  { %1923 = vpow2.f32 %v1515_v37 }
 0x3af   :  { %v1924_v13 = vpop.eup %1923 }
 0x3b0   :  { %v1517_v14 = vadd.f32 1.0, %v1924_v13 }
 0x3b2   :  { %1925 = vrcp.f32 %v1517_v14 }
 0x3bc   :  { %v1926_v3 = vpop.eup %1925 }
 0x3bd   :  { %1519 = vst [vmem:[#allocation2] sm:$0x3] %v1926_v3 }
 0x3be   :  { %1938 = shalt.err (!%p1935_p4)
}
 0x3bf   :  { %s1939_s23 = scalar_lea.hbm %s2601_s7, 32 }
 0x3c0   :  { %p1940_p5 = scmp.ne.s32.totalorder %s2601_s7, %s1939_s23  ;;  %p1943_p6 = scmp.lt.u32.totalorder %s1939_s23, %s2601_s7 }
 0x3c2   :  { %p1945_p7 = pnand %p1943_p6, %p1940_p5 }
 0x3c4   :  { %1948 = shalt.err (!%p1945_p7)
}
 0x3c5   :  { %1529 = dma.vmem_to_hbm [thread:$0]  %s1527_s19, 32, %s2601_s7, [#allocation3]  }
 0x3c6   :  { %1949 = dma.done.wait [#allocation3], 32  }
 0x3c7   :  { %1950 = vsyncadd [#allocation3], 4294967264 }
 0x3c8   :  { %1533 = vsyncpa [#allocation3], 1 }

</bundles_post_ra>
